<compile_context>
chip_gen: v7x
topology: tpu7x:2x2x1
jax: 0.10.0
libtpu: 0.0.40
codegen_flags: <defaults>
</compile_context>

<pallas_src>
import math

import jax
import jax.numpy as jnp
from jax.experimental import pallas as pl
from jax.experimental.pallas import tpu as pltpu

BN_EPS = 1e-5
LANE = 128


def _pad128(n):
    return max(LANE, ((n + LANE - 1) // LANE) * LANE)


def _pad2d(a, rows, cols):
    r, c = a.shape
    return jnp.pad(a, ((0, rows - r), (0, cols - c)))


def _make_kernel(n_layers, n_hidden, n_samples, n_out_pad, use_batch_norm):
    """Kernel body for one grid step == one FC layer (Linear + BN + ReLU)."""
    multi = n_layers > 1

    def kernel(*refs):
        pos = 0
        xin0_ref = refs[pos]; pos += 1                 # (n, k0_pad)   bf16
        hin_init_ref = None
        if multi:
            hin_init_ref = refs[pos]; pos += 1         # (n, kh_pad)   bf16
        w0_ref = refs[pos]; pos += 1                   # (k0_pad, n_max) bf16
        wr_ref = None
        if multi:
            wr_ref = refs[pos]; pos += 1               # (1, kh_pad, n_max) bf16
        bgb_ref = refs[pos]; pos += 1                  # (1, 3, n_max) f32
        o_ref = refs[pos]; pos += 1                    # (n, n_out_pad) f32
        hacc_ref = refs[pos]; pos += 1                 # (n, n_max)    f32 scratch
        hin_ref = refs[pos] if multi else None         # (n, kh_pad)   bf16 scratch

        l = pl.program_id(0)

        # ---- Linear: one matmul per layer (one-hots folded into the input
        #      lanes / weight rows).  bf16 operands, f32 MXU accumulation. ----
        @pl.when(l == 0)
        def _():
            hacc_ref[...] = jnp.dot(xin0_ref[...], w0_ref[...],
                                    preferred_element_type=jnp.float32)
            if multi:
                # Carried hidden-layer input: zeros everywhere, one-hot block
                # pre-placed at lanes [n_hidden, n_hidden + n_cat).
                hin_ref[...] = hin_init_ref[...]

        if multi:
            @pl.when(l > 0)
            def _():
                hacc_ref[...] = jnp.dot(hin_ref[...], wr_ref[0],
                                        preferred_element_type=jnp.float32)

        bgb = bgb_ref[0]                               # (3, n_max): b, gamma, beta
        h = hacc_ref[...] + bgb[0:1, :]

        if use_batch_norm:
            # Single-pass batch statistics (training-mode BatchNorm1d forward,
            # biased variance).  Padded lanes remain 0 (gamma/beta zero-padded).
            inv_n = 1.0 / float(n_samples)
            mean = jnp.sum(h, axis=0, keepdims=True) * inv_n
            ex2 = jnp.sum(h * h, axis=0, keepdims=True) * inv_n
            var = jnp.maximum(ex2 - mean * mean, 0.0)
            scale = bgb[1:2, :] * jax.lax.rsqrt(var + BN_EPS)
            shift = bgb[2:3, :] - mean * scale
            h = h * scale + shift                      # folded BN affine

        h = jnp.maximum(h, 0.0)
        # TODO(synk): nn.Dropout is identity here (eval-mode semantics).

        if multi:
            @pl.when(l < n_layers - 1)
            def _():
                # Hand the activation to the next layer entirely on-chip; the
                # one-hot lanes at [n_hidden:...] are left untouched.
                hin_ref[:, 0:n_hidden] = h[:, 0:n_hidden].astype(hin_ref.dtype)

        @pl.when(l == n_layers - 1)
        def _():
            o_ref[...] = h[:, 0:n_out_pad].astype(o_ref.dtype)

    return kernel


class FCLayersPallas:
    """Pallas re-implementation of vlpi.model.FCLayers (forward pass)."""

    def __init__(self, n_in, n_out, n_cat_list=None, n_layers=1, n_hidden=128,
                 dropout_rate=0.2, use_batch_norm=True, key=None):
        layers_dim = [n_in] + (n_layers - 1) * [n_hidden] + [n_out]
        if n_cat_list is not None:
            self.n_cat_list = [c if c > 1 else 0 for c in n_cat_list]
        else:
            self.n_cat_list = []
        self.n_cat_total = sum(self.n_cat_list)
        self.use_batch_norm = use_batch_norm
        self.dropout_rate = dropout_rate          # eval-mode identity (see TODO)
        self.layers_dim = layers_dim
        self.n_layers = len(layers_dim) - 1
        self.n_hidden = n_hidden

        # Padded geometry.  K dims include the categorical one-hot columns so
        # that each layer is a single MXU pass.
        self.k0_pad = _pad128(layers_dim[0] + self.n_cat_total)
        self.kh_pad = (_pad128(n_hidden + self.n_cat_total)
                       if self.n_layers > 1 else 0)
        self.n_max = max(_pad128(d) for d in layers_dim[1:])
        self.n_out_pad = _pad128(layers_dim[-1])

        key = jax.random.PRNGKey(0) if key is None else key
        self.ref_params = []                      # (w, b, gamma, beta) unpadded f32
        w_pads, bgb_pads = [], []
        for li, (d_in, d_out) in enumerate(zip(layers_dim[:-1], layers_dim[1:])):
            key, k_w, k_b = jax.random.split(key, 3)
            fan_in = d_in + self.n_cat_total
            bound = 1.0 / math.sqrt(float(fan_in))
            w = jax.random.uniform(k_w, (d_out, fan_in), jnp.float32, -bound, bound)
            b = jax.random.uniform(k_b, (1, d_out), jnp.float32, -bound, bound)
            gamma = jnp.ones((1, d_out), jnp.float32)   # BatchNorm1d weight
            beta = jnp.zeros((1, d_out), jnp.float32)   # BatchNorm1d bias
            self.ref_params.append((w, b, gamma, beta))

            k_pad = self.k0_pad if li == 0 else self.kh_pad
            # w.T rows follow the torch.cat([x, one_hot]) column order, which
            # matches the packed input layout; zero rows make padding inert.
            w_pads.append(_pad2d(w.T, k_pad, self.n_max).astype(jnp.bfloat16))
            bgb_pads.append(jnp.stack([_pad2d(b, 1, self.n_max)[0],
                                       _pad2d(gamma, 1, self.n_max)[0],
                                       _pad2d(beta, 1, self.n_max)[0]]))

        self.w0 = w_pads[0]                                        # (k0_pad, n_max)
        self.w_rest = jnp.stack(w_pads[1:]) if self.n_layers > 1 else None
        self.bgb = jnp.stack(bgb_pads)                             # (L, 3, n_max)

    def _one_hot_matrix(self, cat_list):
        assert len(self.n_cat_list) <= len(cat_list), \
            "nb. categorical args provided doesn't match init. params."
        one_hots = []
        for n_cat, cat in zip(self.n_cat_list, cat_list):
            assert not (n_cat and cat is None), \
                "cat not provided while n_cat != 0 in init. params."
            if n_cat > 1:
                if cat.shape[1] != n_cat:
                    oh = jax.nn.one_hot(cat.reshape(-1).astype(jnp.int32),
                                        n_cat, dtype=jnp.float32)
                else:
                    oh = cat.astype(jnp.float32)
                one_hots.append(oh)
        if not one_hots:
            return None
        return jnp.concatenate(one_hots, axis=-1)

    def __call__(self, x, *cat_list):
        n = x.shape[0]
        multi = self.n_layers > 1
        oh = self._one_hot_matrix(cat_list)        # (n, n_cat_total) f32 or None

        # Layer-0 input: [x | one_hot | 0-pad] built directly in bf16.
        parts = [x.astype(jnp.bfloat16)]
        if oh is not None:
            parts.append(oh.astype(jnp.bfloat16))
        xin0 = jnp.concatenate(parts, axis=-1) if len(parts) > 1 else parts[0]
        xin0 = jnp.pad(xin0, ((0, 0), (0, self.k0_pad - xin0.shape[1])))

        inputs = [xin0]
        in_specs = [pl.BlockSpec((n, self.k0_pad), lambda l: (0, 0))]

        if multi:
            # Hidden-layer input template: zeros with the one-hot block at its
            # fixed lane offset (n_hidden); copied to VMEM scratch at layer 0.
            hin_init = jnp.zeros((n, self.kh_pad), jnp.bfloat16)
            if oh is not None:
                hin_init = hin_init.at[
                    :, self.n_hidden:self.n_hidden + self.n_cat_total
                ].set(oh.astype(jnp.bfloat16))
            inputs.append(hin_init)
            in_specs.append(pl.BlockSpec((n, self.kh_pad), lambda l: (0, 0)))

        inputs.append(self.w0)
        in_specs.append(pl.BlockSpec((self.k0_pad, self.n_max), lambda l: (0, 0)))

        if multi:
            inputs.append(self.w_rest)
            # Layer l (>=1) uses block l-1; at l==0 the same slot prefetches
            # layer 1's weights so their DMA hides under layer 0's matmul.
            in_specs.append(pl.BlockSpec(
                (1, self.kh_pad, self.n_max),
                lambda l: (jnp.maximum(l - 1, 0), 0, 0)))

        inputs.append(self.bgb)
        in_specs.append(pl.BlockSpec((1, 3, self.n_max), lambda l: (l, 0, 0)))

        out_specs = pl.BlockSpec((n, self.n_out_pad), lambda l: (0, 0))

        scratch = [pltpu.VMEM((n, self.n_max), jnp.float32)]        # matmul result
        if multi:
            scratch.append(pltpu.VMEM((n, self.kh_pad), jnp.bfloat16))  # carried act

        kernel = _make_kernel(self.n_layers, self.n_hidden, n,
                              self.n_out_pad, self.use_batch_norm)

        flops = 2 * n * self.k0_pad * self.n_max
        flops += 2 * n * self.kh_pad * self.n_max * (self.n_layers - 1)
        transcendentals = self.n_layers * self.n_max if self.use_batch_norm else 0
        bytes_accessed = sum(int(a.size) * a.dtype.itemsize for a in inputs)
        bytes_accessed += n * self.n_out_pad * 4

        out = pl.pallas_call(
            kernel,
            out_shape=jax.ShapeDtypeStruct((n, self.n_out_pad), jnp.float32),
            grid_spec=pltpu.PrefetchScalarGridSpec(
                num_scalar_prefetch=0,
                grid=(self.n_layers,),
                in_specs=in_specs,
                out_specs=out_specs,
                scratch_shapes=scratch),
            compiler_params=pltpu.CompilerParams(
                dimension_semantics=("arbitrary",),
                vmem_limit_bytes=48 * 1024 * 1024),
            cost_estimate=pl.CostEstimate(flops=int(flops),
                                          transcendentals=int(transcendentals),
                                          bytes_accessed=int(bytes_accessed)),
        )(*inputs)
        return out[:, :self.layers_dim[-1]]


def _reference_forward(model, x, *cat_list):
    """Pure-JAX reference with matching bf16-matmul / f32-BN semantics."""
    one_hots = []
    for n_cat, cat in zip(model.n_cat_list, cat_list):
        if n_cat > 1:
            if cat.shape[1] != n_cat:
                one_hots.append(jax.nn.one_hot(cat.reshape(-1).astype(jnp.int32),
                                               n_cat, dtype=jnp.float32))
            else:
                one_hots.append(cat.astype(jnp.float32))
    h = x.astype(jnp.float32)
    for li, (w, b, gamma, beta) in enumerate(model.ref_params):
        xin = jnp.concatenate([h] + one_hots, axis=-1) if one_hots else h
        hm = jnp.dot(xin.astype(jnp.bfloat16), w.T.astype(jnp.bfloat16),
                     preferred_element_type=jnp.float32) + b
        if model.use_batch_norm:
            mean = jnp.mean(hm, axis=0, keepdims=True)
            var = jnp.mean(jnp.square(hm - mean), axis=0, keepdims=True)
            hm = (hm - mean) * jax.lax.rsqrt(var + BN_EPS) * gamma + beta
        h = jnp.maximum(hm, 0.0)
        if li + 1 < model.n_layers:
            h = h.astype(jnp.bfloat16).astype(jnp.float32)  # on-chip bf16 hand-off
    return h


if __name__ == "__main__":
    key = jax.random.PRNGKey(0)
    k_x, k_cat, k_param = jax.random.split(key, 3)

    n_samples, n_in, n_hidden, n_out = 8, 16, 32, 8
    n_cat_list = [3]

    x = jax.random.normal(k_x, (n_samples, n_in), jnp.float32)
    cat = jax.random.randint(k_cat, (n_samples, 1), 0, n_cat_list[0], jnp.int32)

    model = FCLayersPallas(n_in=n_in, n_out=n_out, n_cat_list=n_cat_list,
                           n_layers=2, n_hidden=n_hidden, dropout_rate=0.2,
                           use_batch_norm=True, key=k_param)

    out = jax.block_until_ready(model(x, cat))
    ref = _reference_forward(model, x, cat)

    assert out.shape == (n_samples, n_out), out.shape
    max_err = float(jnp.max(jnp.abs(out - ref)))
    assert jnp.allclose(out, ref, atol=2e-3, rtol=2e-3), max_err

    print("KERNEL_OK")
</pallas_src>

<mosaic_0001>
module attributes {stable_mosaic.version = 11 : i64} {
  func.func @kernel(%arg0: i32, %arg1: memref<8x128xbf16, #tpu.memory_space<vmem>>, %arg2: memref<8x128xbf16, #tpu.memory_space<vmem>>, %arg3: memref<128x128xbf16, #tpu.memory_space<vmem>>, %arg4: memref<1x128x128xbf16, #tpu.memory_space<vmem>>, %arg5: memref<1x3x128xf32, #tpu.memory_space<vmem>>, %arg6: memref<8x128xf32, #tpu.memory_space<vmem>>, %arg7: memref<8x128xf32, #tpu.memory_space<vmem>>, %arg8: memref<8x128xbf16, #tpu.memory_space<vmem>>) attributes {dimension_semantics = [#tpu.dimension_semantics<arbitrary>], iteration_bounds = array<i64: 2>, scalar_prefetch = 0 : i64, scratch_operands = 2 : i64, tpu.core_type = #tpu.core_type<tc>, window_params = [{pipeline_mode = #tpu.pipeline_mode<synchronous>, transform_indices = @transform_0, window_bounds = array<i64: 8, 128>}, {pipeline_mode = #tpu.pipeline_mode<synchronous>, transform_indices = @transform_1, window_bounds = array<i64: 8, 128>}, {pipeline_mode = #tpu.pipeline_mode<synchronous>, transform_indices = @transform_2, window_bounds = array<i64: 128, 128>}, {transform_indices = @transform_3, window_bounds = array<i64: 1, 128, 128>}, {transform_indices = @transform_4, window_bounds = array<i64: 1, 3, 128>}, {pipeline_mode = #tpu.pipeline_mode<synchronous>, transform_indices = @transform_5, window_bounds = array<i64: 8, 128>}]} {
    %c0_i32 = arith.constant 0 : i32
    %0 = arith.cmpi eq, %arg0, %c0_i32 : i32
    %1 = arith.extui %0 : i1 to i32
    %c0_i32_0 = arith.constant 0 : i32
    %2 = arith.cmpi ne, %1, %c0_i32_0 : i32
    scf.if %2 {
      %c0_16 = arith.constant 0 : index
      %c0_17 = arith.constant 0 : index
      %45 = vector.load %arg1[%c0_16, %c0_17] : memref<8x128xbf16, #tpu.memory_space<vmem>>, vector<8x128xbf16>
      %c0_18 = arith.constant 0 : index
      %c0_19 = arith.constant 0 : index
      %46 = vector.load %arg3[%c0_18, %c0_19] : memref<128x128xbf16, #tpu.memory_space<vmem>>, vector<128x128xbf16>
      %cst_20 = arith.constant dense<0.000000e+00> : vector<8x128xf32>
      %47 = tpu.matmul %45, %46, %cst_20 {dimension_numbers = #tpu.dot_dimension_numbers<[1], [0], [0], [1], [0, 0, 1, 1], [], []>} : vector<8x128xbf16>, vector<128x128xbf16>, vector<8x128xf32> -> vector<8x128xf32>
      %c0_21 = arith.constant 0 : index
      %c0_22 = arith.constant 0 : index
      %48 = vector.load %arg7[%c0_21, %c0_22] : memref<8x128xf32, #tpu.memory_space<vmem>>, vector<8x128xf32>
      tpu.vector_store %arg7[%c0_21, %c0_22], %47 {strides = array<i32>} : memref<8x128xf32, #tpu.memory_space<vmem>>, vector<8x128xf32>,
      %c0_23 = arith.constant 0 : index
      %c0_24 = arith.constant 0 : index
      %49 = vector.load %arg2[%c0_23, %c0_24] : memref<8x128xbf16, #tpu.memory_space<vmem>>, vector<8x128xbf16>
      %c0_25 = arith.constant 0 : index
      %c0_26 = arith.constant 0 : index
      %50 = vector.load %arg8[%c0_25, %c0_26] : memref<8x128xbf16, #tpu.memory_space<vmem>>, vector<8x128xbf16>
      tpu.vector_store %arg8[%c0_25, %c0_26], %49 {strides = array<i32>} : memref<8x128xbf16, #tpu.memory_space<vmem>>, vector<8x128xbf16>,
    } else {
    }
    %c0_i32_1 = arith.constant 0 : i32
    %3 = arith.cmpi sgt, %arg0, %c0_i32_1 : i32
    %4 = arith.extui %3 : i1 to i32
    %c0_i32_2 = arith.constant 0 : i32
    %5 = arith.cmpi ne, %4, %c0_i32_2 : i32
    scf.if %5 {
      %c0_16 = arith.constant 0 : index
      %c0_17 = arith.constant 0 : index
      %45 = vector.load %arg8[%c0_16, %c0_17] : memref<8x128xbf16, #tpu.memory_space<vmem>>, vector<8x128xbf16>
      %c0_18 = arith.constant 0 : index
      %c0_19 = arith.constant 0 : index
      %c0_20 = arith.constant 0 : index
      %46 = vector.load %arg4[%c0_18, %c0_19, %c0_20] : memref<1x128x128xbf16, #tpu.memory_space<vmem>>, vector<1x128x128xbf16>
      %47 = vector.shape_cast %46 : vector<1x128x128xbf16> to vector<128x128xbf16>
      %cst_21 = arith.constant dense<0.000000e+00> : vector<8x128xf32>
      %48 = tpu.matmul %45, %47, %cst_21 {dimension_numbers = #tpu.dot_dimension_numbers<[1], [0], [0], [1], [0, 0, 1, 1], [], []>} : vector<8x128xbf16>, vector<128x128xbf16>, vector<8x128xf32> -> vector<8x128xf32>
      %c0_22 = arith.constant 0 : index
      %c0_23 = arith.constant 0 : index
      %49 = vector.load %arg7[%c0_22, %c0_23] : memref<8x128xf32, #tpu.memory_space<vmem>>, vector<8x128xf32>
      tpu.vector_store %arg7[%c0_22, %c0_23], %48 {strides = array<i32>} : memref<8x128xf32, #tpu.memory_space<vmem>>, vector<8x128xf32>,
    } else {
    }
    %c0 = arith.constant 0 : index
    %c0_3 = arith.constant 0 : index
    %c0_4 = arith.constant 0 : index
    %6 = vector.load %arg5[%c0, %c0_3, %c0_4] : memref<1x3x128xf32, #tpu.memory_space<vmem>>, vector<1x3x128xf32>
    %7 = vector.shape_cast %6 : vector<1x3x128xf32> to vector<3x128xf32>
    %c0_5 = arith.constant 0 : index
    %c0_6 = arith.constant 0 : index
    %8 = vector.load %arg7[%c0_5, %c0_6] : memref<8x128xf32, #tpu.memory_space<vmem>>, vector<8x128xf32>
    %9 = vector.extract_strided_slice %7 {offsets = [0, 0], sizes = [1, 128], strides = [1, 1]} : vector<3x128xf32> to vector<1x128xf32>
    %10 = vector.broadcast %9 : vector<1x128xf32> to vector<8x128xf32>
    %11 = arith.addf %8, %10 : vector<8x128xf32>
    %cst = arith.constant dense<0.000000e+00> : vector<128xf32>
    %12 = vector.multi_reduction <add>, %11, %cst [0] : vector<8x128xf32> to vector<128xf32>
    %13 = vector.shape_cast %12 : vector<128xf32> to vector<1x128xf32>
    %cst_7 = arith.constant 1.250000e-01 : f32
    %14 = vector.broadcast %cst_7 : f32 to vector<1x128xf32>
    %15 = arith.mulf %13, %14 : vector<1x128xf32>
    %16 = arith.mulf %11, %11 : vector<8x128xf32>
    %cst_8 = arith.constant dense<0.000000e+00> : vector<128xf32>
    %17 = vector.multi_reduction <add>, %16, %cst_8 [0] : vector<8x128xf32> to vector<128xf32>
    %18 = vector.shape_cast %17 : vector<128xf32> to vector<1x128xf32>
    %cst_9 = arith.constant 1.250000e-01 : f32
    %19 = vector.broadcast %cst_9 : f32 to vector<1x128xf32>
    %20 = arith.mulf %18, %19 : vector<1x128xf32>
    %21 = arith.mulf %15, %15 : vector<1x128xf32>
    %22 = arith.subf %20, %21 : vector<1x128xf32>
    %cst_10 = arith.constant 0.000000e+00 : f32
    %23 = vector.broadcast %cst_10 : f32 to vector<1x128xf32>
    %24 = arith.maximumf %22, %23 : vector<1x128xf32>
    %25 = vector.extract_strided_slice %7 {offsets = [1, 0], sizes = [1, 128], strides = [1, 1]} : vector<3x128xf32> to vector<1x128xf32>
    %cst_11 = arith.constant 9.99999974E-6 : f32
    %26 = vector.broadcast %cst_11 : f32 to vector<1x128xf32>
    %27 = arith.addf %24, %26 : vector<1x128xf32>
    %28 = math.rsqrt %27 : vector<1x128xf32>
    %29 = arith.mulf %25, %28 : vector<1x128xf32>
    %30 = vector.extract_strided_slice %7 {offsets = [2, 0], sizes = [1, 128], strides = [1, 1]} : vector<3x128xf32> to vector<1x128xf32>
    %31 = arith.mulf %15, %29 : vector<1x128xf32>
    %32 = arith.subf %30, %31 : vector<1x128xf32>
    %33 = vector.broadcast %29 : vector<1x128xf32> to vector<8x128xf32>
    %34 = arith.mulf %11, %33 : vector<8x128xf32>
    %35 = vector.broadcast %32 : vector<1x128xf32> to vector<8x128xf32>
    %36 = arith.addf %34, %35 : vector<8x128xf32>
    %cst_12 = arith.constant 0.000000e+00 : f32
    %37 = vector.broadcast %cst_12 : f32 to vector<8x128xf32>
    %38 = arith.maximumf %36, %37 : vector<8x128xf32>
    %c1_i32 = arith.constant 1 : i32
    %39 = arith.cmpi slt, %arg0, %c1_i32 : i32
    %40 = arith.extui %39 : i1 to i32
    %c0_i32_13 = arith.constant 0 : i32
    %41 = arith.cmpi ne, %40, %c0_i32_13 : i32
    scf.if %41 {
      %45 = vector.extract_strided_slice %38 {offsets = [0, 0], sizes = [8, 32], strides = [1, 1]} : vector<8x128xf32> to vector<8x32xf32>
      %46 = arith.truncf %45 : vector<8x32xf32> to vector<8x32xbf16>
      %c0_16 = arith.constant 0 : index
      %c0_17 = arith.constant 0 : index
      %47 = vector.load %arg8[%c0_16, %c0_17] : memref<8x128xbf16, #tpu.memory_space<vmem>>, vector<8x32xbf16>
      tpu.vector_store %arg8[%c0_16, %c0_17], %46 {strides = array<i32>} : memref<8x128xbf16, #tpu.memory_space<vmem>>, vector<8x32xbf16>,
    } else {
    }
    %c1_i32_14 = arith.constant 1 : i32
    %42 = arith.cmpi eq, %arg0, %c1_i32_14 : i32
    %43 = arith.extui %42 : i1 to i32
    %c0_i32_15 = arith.constant 0 : i32
    %44 = arith.cmpi ne, %43, %c0_i32_15 : i32
    scf.if %44 {
      %c0_16 = arith.constant 0 : index
      %c0_17 = arith.constant 0 : index
      %45 = vector.load %arg6[%c0_16, %c0_17] : memref<8x128xf32, #tpu.memory_space<vmem>>, vector<8x128xf32>
      tpu.vector_store %arg6[%c0_16, %c0_17], %38 {strides = array<i32>} : memref<8x128xf32, #tpu.memory_space<vmem>>, vector<8x128xf32>,
    } else {
    }
    return
  }
  func.func @transform_0(%arg0: i32) -> (i32, i32) {
    %c0_i32 = arith.constant 0 : i32
    %c0_i32_0 = arith.constant 0 : i32
    %c0_i32_1 = arith.constant 0 : i32
    return %c0_i32, %c0_i32_0 : i32, i32
  }
  func.func @transform_1(%arg0: i32) -> (i32, i32) {
    %c0_i32 = arith.constant 0 : i32
    %c0_i32_0 = arith.constant 0 : i32
    %c0_i32_1 = arith.constant 0 : i32
    return %c0_i32, %c0_i32_0 : i32, i32
  }
  func.func @transform_2(%arg0: i32) -> (i32, i32) {
    %c0_i32 = arith.constant 0 : i32
    %c0_i32_0 = arith.constant 0 : i32
    %c0_i32_1 = arith.constant 0 : i32
    return %c0_i32, %c0_i32_0 : i32, i32
  }
  func.func @transform_3(%arg0: i32) -> (i32, i32, i32) {
    %c1_i32 = arith.constant 1 : i32
    %0 = arith.subi %arg0, %c1_i32 : i32
    %c0_i32 = arith.constant 0 : i32
    %1 = arith.maxsi %0, %c0_i32 : i32
    %c0_i32_0 = arith.constant 0 : i32
    %c0_i32_1 = arith.constant 0 : i32
    %c0_i32_2 = arith.constant 0 : i32
    return %1, %c0_i32_0, %c0_i32_1 : i32, i32, i32
  }
  func.func @transform_4(%arg0: i32) -> (i32, i32, i32) {
    %c0_i32 = arith.constant 0 : i32
    %c0_i32_0 = arith.constant 0 : i32
    %c0_i32_1 = arith.constant 0 : i32
    return %arg0, %c0_i32, %c0_i32_0 : i32, i32, i32
  }
  func.func @transform_5(%arg0: i32) -> (i32, i32) {
    %c0_i32 = arith.constant 0 : i32
    %c0_i32_0 = arith.constant 0 : i32
    %c0_i32_1 = arith.constant 0 : i32
    return %c0_i32, %c0_i32_0 : i32, i32
  }
}

</mosaic_0001>

<bundles_post_ra>
// kernel: tpu_custom_call.1
= control target key start
LH: loop header
LB: loop body
LE: loop exit
PB: predicated region body
PF: predicated region fallthrough
CT: control target
= control target key end

     0   :  { %10 = vsyncpa [#allocation5], 0  ;;  %s1178_s0 = inlined_call_operand.vmem [shape: bf16[8,128], index: 0, kind: input, shape index: {}]   ;;  %s1179_s1 = inlined_call_operand.vmem [shape: bf16[8,128], index: 1, kind: input, shape index: {}]   ;;  %s1180_s2 = inlined_call_operand.hbm [shape: bf16[128,128], index: 2, kind: input, shape index: {}]   ;;  %s1181_s3 = inlined_call_operand.hbm [shape: bf16[1,128,128], index: 3, kind: input, shape index: {}]   ;;  %s1182_s4 = inlined_call_operand.vmem [shape: f32[2,3,128], index: 4, kind: input, shape index: {}]   ;;  %s1183_s5 = inlined_call_operand.hbm [shape: f32[8,128], index: 5, kind: output, shape index: {}]  }
   0x1   :  { %11 = vsyncpa [#allocation8], 0 }
   0x2   :  { %13 = vsyncpa [#allocation8 + $0x1], 0 }
   0x3   :  { %14 = vsyncpa [#allocation6], 0  ;;  %s980_s18 = smov 0   ;;  %s982_s19 = smov 0  }
   0x4   :  { %s984_s20 = smov 0   ;;  %s986_s21 = smov 0  }
   0x5 LB: > { %s999_s22 = sadd.s32 4294967295, %s939_s21   ;;  %p109_p0 = scmp.ne.s32.totalorder %s931_s19, %s927_s18  ;;  %s939_s21 = sphi %s986_s21, %s1200_s21   ;;  %s935_s20 = sphi %s984_s20, %s1199_s20   ;;  %s931_s19 = sphi %s982_s19, %s1198_s19   ;;  %s927_s18 = sphi %s980_s18, %s1197_s18  }
   0x6   : > { %p1184_p1 = scmp.eq.s32.totalorder %s999_s22, 0  ;;  %p638_p2 = scmp.ge.s32.totalorder %s939_s21, 1 }
   0x7   : > { %p167_p3 = scmp.lt.s32.totalorder %s939_s21, 3  ;;  %s941_s25 = smov [#allocation4]  }
   0x8   : > { %p1008_p5 = por %p1184_p1, %p109_p0  ;;  %s185_s26 = sshll.u32 %s941_s25, 4  ;;  %s186_s26 = int_to_ptr.vmem [resolvable:$true] %s185_s26 }
   0x9   : > { %p1012_p6 = pnand %p638_p2, %p167_p3  ;;  %s1025_s28 = sadd.s32 1, %s939_s21  }
   0xa   : > { %s1187_s23 = scalar_select %p1008_p5, 1, 0 }
   0xb   : > { %s1188_s24 = scalar_select %p1012_p6, 1, 0 }
   0xc   : > { %p742_p7 = pneg %p1012_p6  ;;  %s637_s29 = sadd.s32 4294967295, %s1025_s28 }
   0xd   : > { %s813_s7 = scalar_lea.hbm %s1180_s2, 1024 }
   0xe   : > { %p1020_p8 = pnand %p742_p7, %p1184_p1  ;;  %p814_p10 = scmp.ne.s32.totalorder %s1180_s2, %s813_s7 }
   0xf   : > { %p820_p0 = scmp.lt.u32.totalorder %s813_s7, %s1180_s2 }
  0x10   : > { %p815_p11 = pneg %p1020_p8 }
  0x12   : > { %p816_p12 = pnand %p815_p11, %p814_p10 }
  0x14   : > { %p817_p13 = pneg %p816_p12 }
  0x16   : > { %p822_p2 = pnand %p820_p0, %p817_p13 }
  0x18   : > { %825 = shalt.err (!%p822_p2)
}
  0x19   : > { %s826_s12 = scalar_lea.vmem %s186_s26, 1024  ;;  %p834_p1 = scmp.lt.s32.totalorder %s186_s26, %s186_s26 }
  0x1a   : > { %p827_p3 = scmp.ne.s32.totalorder %s186_s26, %s826_s12  ;;  %p835_p9 = scmp.lt.s32.totalorder %s826_s12, %s826_s12 }
  0x1c   : > { %p829_p7 = pnand %p827_p3, %p815_p11  ;;  %p836_p5 = por %p835_p9, %p834_p1 }
  0x1e   : > { %p830_p4 = pneg %p829_p7 }
  0x20   : > { %p837_p6 = pnand %p836_p5, %p830_p4 }
  0x22   : > { %840 = shalt.err (!%p837_p6)
}
  0x23   : > { %s942_s13 = smov 64   ;;  %s943_s14 = smov 4  }
  0x24   : > { %745 = dma.hbm_to_vmem [thread:$0]  (!%p1020_p8), %s1180_s2, 1024, %s186_s26, [#allocation5], %s942_s13, %s942_s13, %s943_s14  }
  0x25   : > { %p1190_p1 = scmp.gt.s32.totalorder %s999_s22, 0  ;;  %p91_p4 = scmp.gt.s32.totalorder %s637_s29, 0 }
  0x26   : > { %s96_s18 = sadd.s32 1, %s935_s20  ;;  %p103_p5 = scmp.ne.s32.totalorder %s935_s20, %s931_s19 }
  0x27   : > { %s89_s17 = scalar_select %p1190_p1, %s999_s22, 0 }
  0x28   : > { %p104_p6 = scmp.eq.s32.totalorder %s939_s21, 0  ;;  %s1202_s29 = smov (!%p91_p4, %s637_s29), 0 }
  0x29   : > { %p751_p10 = scmp.lt.s32.totalorder %s939_s21, 2  ;;  %s93_s25 = ssub.s32 %s89_s17, %s1202_s29 }
  0x2a   : > { %p105_p9 = por %p104_p6, %p103_p5  ;;  %s199_s30 = sand.u32 1, %s935_s20  }
  0x2b   : > { %p94_p11 = scmp.eq.s32.totalorder %s93_s25, 0  ;;  %s641_s27 = sshll.u32 %s199_s30, 6 }
  0x2c   : > { %s673_s6 = sshll.u32 %s89_s17, 10  ;;  %s203_s10 = scalar_lea.vmem [#allocation7], %s641_s27 }
  0x2d   : > { %s1058_s7 = scalar_select %p94_p11, %s935_s20, %s96_s18  }
  0x2e   : > { %s1063_s26 = scalar_lea.hbm %s1181_s3, %s673_s6  ;;  %s213_s11 = sshll.u32 %s203_s10, 4  ;;  %s1069_s11 = int_to_ptr.vmem [resolvable:$true] %s213_s11 }
  0x2f   : > { %p1065_p8 = pnand %p751_p10, %p105_p9  ;;  %s1071_s29 = scalar_lea.sflag [#allocation8], %s199_s30 }
  0x30   : > { %s841_s12 = scalar_lea.hbm %s1063_s26, 1024  ;;  %s846_s17 = scalar_lea.hbm %s1181_s3, 1024 }
  0x31   : > { %p842_p12 = scmp.ne.s32.totalorder %s1063_s26, %s841_s12  ;;  %p843_p13 = pneg %p1065_p8 }
  0x32   : > { %p847_p3 = scmp.lt.u32.totalorder %s1063_s26, %s1181_s3  ;;  %p848_p7 = scmp.lt.u32.totalorder %s846_s17, %s841_s12 }
  0x33   : > { %p844_p0 = pnand %p843_p13, %p842_p12  ;;  %p850_p4 = scmp.lt.u32.totalorder %s841_s12, %s1063_s26 }
  0x34   : > { %p849_p1 = por %p848_p7, %p847_p3 }
  0x35   : > { %p845_p2 = pneg %p844_p0 }
  0x36   : > { %p851_p5 = por %p850_p4, %p849_p1 }
  0x38   : > { %p852_p6 = pnand %p851_p5, %p845_p2 }
  0x3a   : > { %855 = shalt.err (!%p852_p6)
}
  0x3b   : > { %s856_s30 = scalar_lea.vmem %s1069_s11, 1024  ;;  %s944_s27 = smov [#allocation7]  }
  0x3c   : > { %p857_p9 = scmp.ne.s32.totalorder %s1069_s11, %s856_s30  ;;  %s861_s6 = sshll.u32 %s944_s27, 4  ;;  %s862_s6 = int_to_ptr.vmem [resolvable:$false] %s861_s6 }
  0x3d   : > { %s863_s8 = scalar_lea.vmem %s862_s6, 2048  ;;  %p864_p12 = scmp.lt.s32.totalorder %s1069_s11, %s862_s6 }
  0x3e   : > { %p859_p10 = pnand %p857_p9, %p843_p13  ;;  %p865_p0 = scmp.lt.s32.totalorder %s863_s8, %s856_s30 }
  0x40   : > { %p860_p11 = pneg %p859_p10  ;;  %p866_p3 = por %p865_p0, %p864_p12 }
  0x42   : > { %p867_p7 = pnand %p866_p3, %p860_p11 }
  0x44   : > { %870 = shalt.err (!%p867_p7)
}
  0x45   : > { %749 = dma.hbm_to_vmem [thread:$0]  (!%p1065_p8), %s1063_s26, 1024, %s1069_s11, %s1071_s29, %s942_s13, %s942_s13, %s943_s14  }
  0x46   : > { %p1192_p13 = scmp.ne.s32.totalorder %s1188_s24, 0 }
  0x47   : > { %p1193_p2 = scmp.eq.s32.totalorder (!%p1192_p13), %s999_s22, 0 }
  0x48   : > { %232 = sbr.rel (%p1192_p13) target bundleno = 677 (0x2a5), region = 40 }
  0x4f   : > { %914 = dma.done.wait (%p1193_p2), [#allocation5], 1024   ;;  %p1194_p1 = pmov %p1193_p2 }
  0x50   : > { %s238_s9 = sand.u32 1, %s931_s19   ;;  %p1195_p4 = scmp.ne.s32.totalorder %s1187_s23, 0 }
  0x51   : > { %916 = vsyncadd (%p1194_p1), [#allocation5], 4294966272  ;;  %s647_s10 = sshll.u32 %s238_s9, 6  ;;  %s239_s21 = scalar_lea.sflag [#allocation8], %s238_s9 }
  0x52   : > { %s1109_s12 = scalar_lea.vmem [#allocation7], %s647_s10 }
  0x53   : > { %918 = dma.done.wait (%p1195_p4), %s239_s21, 1024  }
  0x54   : > { %920 = vsyncadd (%p1195_p4), %s239_s21, 4294966272  ;;  %p271_p8 = scmp.lt.s32.totalorder %s999_s22, 1  ;;  %p1196_p5 = scmp.ne.s32.totalorder %s999_s22, 0 }
  0x55   : > { %v795_v0 = vld [vmem:[#allocation4] sm:$0xff] (!%p1196_p5)   ;;  %v945_v1 = vmov (!%p1196_p5), 0.0   ;;  %v796_v2 = vld [vmem:[#allocation4 + $0x8] sm:$0xff] (!%p1196_p5)   ;;  %vm946_vm0 = vmmov (!%p1196_p5), 0   ;;  %v797_v3 = vld [vmem:[#allocation4 + $0x10] sm:$0xff] (!%p1196_p5)  }
  0x56   : > { %s272_s24 = scalar_select %p271_p8, %s999_s22, 1 }
  0x57   : > { %279 = sbr.rel (%p1196_p5) target bundleno = 334 (0x14e), region = 52  ;;  %692 = vmatprep.subr.bf16.mxu0 (!%p1196_p5), %v945_v1  ;;  %708 = vmatprep.mubr.msk.bf16.mxu0 (!%p1196_p5), %vm946_vm0, %v945_v1  ;;  %v798_v4 = vld [vmem:[#allocation4 + $0x18] sm:$0xff] (!%p1196_p5)   ;;  %v799_v5 = vld [vmem:[#allocation4 + $0x20] sm:$0xff] (!%p1196_p5)   ;;  %v800_v6 = vld [vmem:[#allocation4 + $0x28] sm:$0xff] (!%p1196_p5)  }
  0x58   : > { %s648_s13 = sshll.u32 %s272_s24, 2  ;;  %693 = vmatpush3.bf16.msra.mxu0 (!%p1196_p5), %v795_v0  ;;  %v801_v7 = vld [vmem:[#allocation4 + $0x30] sm:$0xff] (!%p1196_p5)   ;;  %v802_v8 = vld [vmem:[#allocation4 + $0x38] sm:$0xff] (!%p1196_p5)  }
  0x59   : > { %s1120_s11 = scalar_lea.vmem %s1182_s4, %s648_s13  ;;  %694 = vmatprep.subr.bf16.mxu0 (!%p1196_p5), %v945_v1  ;;  %v280_v9 = vld [vmem:[%s1178_s0] sm:$0xf] (!%p1196_p5) }
  0x5a   : > { %v386_v10 = vld [vmem:[%s1179_s1] sm:$0xf] (!%p1196_p5) }
  0x5b   : > { %387 = vst [vmem:[#allocation3] sm:$0xf] (!%p1196_p5), %v386_v10 }
  0x5c   : > { %695 = vmatpush3.bf16.msra.mxu0 (!%p1196_p5), %v796_v2 }
  0x5d   : > { %696 = vmatprep.subr.bf16.mxu0 (!%p1196_p5), %v945_v1 }
  0x60   : > { %697 = vmatpush3.bf16.msra.mxu0 %v797_v3 }
  0x61   : > { %698 = vmatprep.subr.bf16.mxu0 %v945_v1 }
  0x64   : > { %699 = vmatpush3.bf16.msra.mxu0 %v798_v4 }
  0x65   : > { %700 = vmatprep.subr.bf16.mxu0 %v945_v1 }
  0x68   : > { %701 = vmatpush3.bf16.msra.mxu0 %v799_v5 }
  0x69   : > { %702 = vmatprep.subr.bf16.mxu0 %v945_v1 }
  0x6c   : > { %703 = vmatpush3.bf16.msra.mxu0 %v800_v6 }
  0x6d   : > { %704 = vmatprep.subr.bf16.mxu0 %v945_v1 }
  0x70   : > { %705 = vmatpush3.bf16.msra.mxu0 %v801_v7 }
  0x71   : > { %706 = vmatprep.subr.bf16.mxu0 %v945_v1 }
  0x74   : > { %707 = vmatpush3.bf16.msra.mxu0 %v802_v8 }
  0x77   : > { %709 = vmatmul.mubr.bf16.vlgmr.msra.gmra.mrb[0].mxu0 %v280_v9 }
 0x14a   : > { %v379_v11 = vpop.f32.mrb[0].mxu0 }
 0x14b   : > { %385 = vst [vmem:[#allocation2] sm:$0xff] %v379_v11  ;;  %v710_v12 = vpop.f32.mrb[1].mxu0 }
 0x14c   : > { %v382_v13 = vpop.f32.mrb[2].mxu0 }
 0x14d   : > { %v711_v14 = vpop.f32.mrb[3].mxu0 }
 0x14e PF: > { %p658_p6 = scmp.le.s32.totalorder %s999_s22, 0 }
 0x14f   : > { %v803_v15 = vld [vmem:[%s1109_s12] sm:$0xff] (!%p658_p6)   ;;  %v947_v16 = vmov (!%p658_p6), 0.0   ;;  %v804_v17 = vld [vmem:[%s1109_s12 + $0x8] sm:$0xff] (!%p658_p6)   ;;  %vm948_vm1 = vmmov (!%p658_p6), 0   ;;  %v805_v18 = vld [vmem:[%s1109_s12 + $0x10] sm:$0xff] (!%p658_p6)  }
 0x150   : > { %391 = sbr.rel (%p658_p6) target bundleno = 583 (0x247), region = 56  ;;  %712 = vmatprep.subr.bf16.mxu0 (!%p658_p6), %v947_v16  ;;  %728 = vmatprep.mubr.msk.bf16.mxu0 (!%p658_p6), %vm948_vm1, %v947_v16  ;;  %v806_v19 = vld [vmem:[%s1109_s12 + $0x18] sm:$0xff] (!%p658_p6)   ;;  %v807_v20 = vld [vmem:[%s1109_s12 + $0x20] sm:$0xff] (!%p658_p6)   ;;  %v808_v21 = vld [vmem:[%s1109_s12 + $0x28] sm:$0xff] (!%p658_p6)  }
 0x151   : > { %713 = vmatpush3.bf16.msra.mxu0 (!%p658_p6), %v803_v15  ;;  %v809_v22 = vld [vmem:[%s1109_s12 + $0x30] sm:$0xff] (!%p658_p6)   ;;  %v810_v23 = vld [vmem:[%s1109_s12 + $0x38] sm:$0xff] (!%p658_p6)  }
 0x152   : > { %714 = vmatprep.subr.bf16.mxu0 (!%p658_p6), %v947_v16  ;;  %v392_v24 = vld [vmem:[#allocation3] sm:$0xf] (!%p658_p6) }
 0x155   : > { %715 = vmatpush3.bf16.msra.mxu0 (!%p658_p6), %v804_v17 }
 0x156   : > { %716 = vmatprep.subr.bf16.mxu0 (!%p658_p6), %v947_v16 }
 0x159   : > { %717 = vmatpush3.bf16.msra.mxu0 %v805_v18 }
 0x15a   : > { %718 = vmatprep.subr.bf16.mxu0 %v947_v16 }
 0x15d   : > { %719 = vmatpush3.bf16.msra.mxu0 %v806_v19 }
 0x15e   : > { %720 = vmatprep.subr.bf16.mxu0 %v947_v16 }
 0x161   : > { %721 = vmatpush3.bf16.msra.mxu0 %v807_v20 }
 0x162   : > { %722 = vmatprep.subr.bf16.mxu0 %v947_v16 }
 0x165   : > { %723 = vmatpush3.bf16.msra.mxu0 %v808_v21 }
 0x166   : > { %724 = vmatprep.subr.bf16.mxu0 %v947_v16 }
 0x169   : > { %725 = vmatpush3.bf16.msra.mxu0 %v809_v22 }
 0x16a   : > { %726 = vmatprep.subr.bf16.mxu0 %v947_v16 }
 0x16d   : > { %727 = vmatpush3.bf16.msra.mxu0 %v810_v23 }
 0x170   : > { %729 = vmatmul.mubr.bf16.vlgmr.msra.gmra.mrb[0].mxu0 %v392_v24 }
 0x243   : > { %v491_v25 = vpop.f32.mrb[0].mxu0 }
 0x244   : > { %497 = vst [vmem:[#allocation2] sm:$0xff] %v491_v25  ;;  %v730_v26 = vpop.f32.mrb[1].mxu0 }
 0x245   : > { %v494_v27 = vpop.f32.mrb[2].mxu0 }
 0x246   : > { %v731_v28 = vpop.f32.mrb[3].mxu0 }
 0x247 PF: > { %v500_v29 = vlaneseq  ;;  %v498_v31 = vld [vmem:[%s1120_s11] sm:$0x7]  ;;  %p667_p9 = scmp.ge.s32.totalorder %s999_s22, 1 }
 0x248   : > { %vm547_vm2 = vcmask (!%p667_p9), 257024  }
 0x249   : > { %v501_v30 = vshrl.u32 %v500_v29, 7 }
 0x24b   : > { %v502_v32 = vsub.s32 0, %v501_v30  ;;  %v499_v33 = vld [vmem:[#allocation2] sm:$0xff]  ;;  %v533_v55 = vsub.s32 1, %v501_v30  ;;  %v538_v61 = vsub.s32 2, %v501_v30 }
 0x24d   : > { %v503_v34 = vrot.slane %v498_v31, %v502_v32 }
 0x24f   : > { %v504_v35 = vadd.f32 %v503_v34, %v499_v33 }
 0x251   : > { %v505_v36 = vrot.slane %v504_v35, 4  ;;  %v512_v37 = vmul.f32 %v504_v35, %v504_v35 }
 0x253   : > { %v506_v38 = vadd.f32 %v505_v36, %v504_v35  ;;  %v513_v39 = vrot.slane %v512_v37, 4 }
 0x255   : > { %v507_v40 = vrot.slane %v506_v38, 2  ;;  %v514_v41 = vadd.f32 %v513_v39, %v512_v37 }
 0x257   : > { %v508_v42 = vadd.f32 %v507_v40, %v506_v38  ;;  %v515_v43 = vrot.slane %v514_v41, 2 }
 0x259   : > { %v509_v44 = vrot.slane %v508_v42, 1  ;;  %v516_v45 = vadd.f32 %v515_v43, %v514_v41 }
 0x25b   : > { %v510_v46 = vadd.f32 %v509_v44, %v508_v42  ;;  %v517_v47 = vrot.slane %v516_v45, 1 }
 0x25d   : > { %v511_v48 = vmul.f32 0.125, %v510_v46  ;;  %v518_v49 = vadd.f32 %v517_v47, %v516_v45 }
 0x25f   : > { %v519_v50 = vmul.f32 0.125, %v518_v49  ;;  %v520_v51 = vmul.f32 %v511_v48, %v511_v48 }
 0x261   : > { %v521_v52 = vsub.f32 %v519_v50, %v520_v51 }
 0x263   : > { %v522_v53 = vmax.f32 %v521_v52, 0.0 }
 0x265   : > { %v523_v54 = vadd.f32 1e-05, %v522_v53 }
 0x267   : > { %811 = vrsqrt.f32 %v523_v54 }
 0x271   : > { %v812_v56 = vpop.eup %811 }
 0x272   : > { %v525_v57 = vmul.f32 %v812_v56, %v498_v31 }
 0x274   : > { %v526_v58 = vmul.f32 %v525_v57, %v511_v48  ;;  %v534_v59 = vrot.slane %v525_v57, %v533_v55 }
 0x276   : > { %v528_v60 = vrot.slane %v526_v58, 7  ;;  %v535_v63 = vmul.f32 %v534_v59, %v504_v35 }
 0x278   : > { %v530_v62 = vsub.f32 %v498_v31, %v528_v60  ;;  %545 = sbr.rel (%p667_p9) target bundleno = 643 (0x283), region = 60 }
 0x27a   : > { %v539_v0 = vrot.slane %v530_v62, %v538_v61 }
 0x27c   : > { %v540_v1 = vadd.f32 %v539_v0, %v535_v63 }
 0x27e   : > { %v541_v2 = vmax.f32 %v540_v1, 0.0 }
 0x280   : > { %v546_v3 = vpack.c.bf16 %v541_v2, %v541_v2 }
 0x282   : > { %548 = vst.msk [vmem:[#allocation3] sm:$0xf] %vm547_vm2, %v546_v3 }
 0x283 PF: > { %p668_p10 = scmp.ne.s32.totalorder %s999_s22, 1 }
 0x284   : > { %553 = vst [vmem:[#allocation9] sm:$0xff] (!%p668_p10), %v541_v2 }
 0x285   : > { %552 = sbr.rel (%p668_p10) target bundleno = 652 (0x28c), region = 64 }
 0x28c PF: > { %p753_p11 = scmp.eq.s32.totalorder %s999_s22, 1  ;;  %s949_s17 = smov [#allocation9]  }
 0x28d   : > { %s561_s18 = sshll.u32 %s949_s17, 4  ;;  %s562_s18 = int_to_ptr.vmem [resolvable:$true] %s561_s18 }
 0x28e   : > { %s871_s25 = scalar_lea.vmem %s562_s18, 128  ;;  %p878_p7 = scmp.lt.s32.totalorder %s562_s18, %s562_s18 }
 0x28f   : > { %p872_p12 = scmp.ne.s32.totalorder %s562_s18, %s871_s25  ;;  %p879_p13 = scmp.lt.s32.totalorder %s871_s25, %s871_s25 }
 0x291   : > { %p873_p0 = pnand %p872_p12, %p753_p11  ;;  %p880_p2 = por %p879_p13, %p878_p7 }
 0x293   : > { %p874_p3 = pneg %p873_p0 }
 0x295   : > { %p881_p1 = pnand %p880_p2, %p874_p3 }
 0x297   : > { %884 = shalt.err (!%p881_p1)
}
 0x298   : > { %s885_s6 = scalar_lea.hbm %s1183_s5, 128 }
 0x299   : > { %p886_p4 = scmp.ne.s32.totalorder %s1183_s5, %s885_s6  ;;  %p891_p6 = scmp.lt.u32.totalorder %s885_s6, %s1183_s5 }
 0x29b   : > { %p887_p8 = pnand %p886_p4, %p753_p11 }
 0x29d   : > { %p888_p5 = pneg %p887_p8 }
 0x29f   : > { %p893_p9 = pnand %p891_p6, %p888_p5 }
 0x2a1   : > { %896 = shalt.err (!%p893_p9)
}
 0x2a2   : > { %739 = dma.vmem_to_hbm [thread:$0]  (%p753_p11), %s562_s18, 128, %s1183_s5, [#allocation6]  }
 0x2a3   : > { %922 = dma.done.wait (%p753_p11), [#allocation6], 128  }
 0x2a4   : > { %924 = vsyncadd (%p753_p11), [#allocation6], 4294967168 }
 0x2a5 PF: > { %p17_p10 = scmp.ge.s32.totalorder %s1025_s28, 4   ;;  %s1197_s18 = smov %s931_s19 }
 0x2a6   : > { %s1198_s19 = smov %s935_s20  ;;  %s1199_s20 = smov %s1058_s7 }
 0x2a7   : > { %s1200_s21 = smov %s1025_s28  ;;  %19 = sbr.rel (!%p17_p10) target bundleno = 5 (0x5), region = 101 }
 0x2ae   :  { %574 = vsyncpa [#allocation5], 1 }
 0x2af   :  { %576 = vsyncpa [#allocation5 + $0x1], 1 }
 0x2b0   :  { %577 = vsyncpa [#allocation8], 1 }
 0x2b1   :  { %579 = vsyncpa [#allocation8 + $0x1], 1 }
 0x2b2   :  { %580 = vsyncpa [#allocation6], 1 }
 0x2b3   :  { %582 = vsyncpa [#allocation6 + $0x1], 1 }

</bundles_post_ra>
